<compile_context>
chip_gen: v7x
topology: tpu7x:2x2x1
jax: 0.10.0
libtpu: 0.0.40
codegen_flags: <defaults>
</compile_context>

<pallas_src>
import functools

import jax
import jax.numpy as jnp
from jax.experimental import pallas as pl
from jax.experimental.pallas import tpu as pltpu


def _odefunc_kernel(yT_ref, w1_ref, b1_ref, w2_ref, b2_ref, oT_ref):
    # yT_ref: (2, TB)   w1_ref: (50, 2)  b1_ref: (50, 1)
    # w2_ref: (2, 50)   b2_ref: (2, 1)   oT_ref: (2, TB)
    w1 = w1_ref[...].astype(jnp.float32)                     # (50, 2)
    y0 = yT_ref[0:1, :].astype(jnp.float32)                  # (1, TB)
    y1 = yT_ref[1:2, :].astype(jnp.float32)                  # (1, TB)

    # Layer 1: K=2 contraction as VPU broadcast-FMAs (keeps the MXU slot free).
    h = w1[:, 0:1] * y0 + w1[:, 1:2] * y1 + b1_ref[...].astype(jnp.float32)
    h = jnp.tanh(h)                                          # (50, TB), EUP slot

    # Layer 2: K=50 contraction on the MXU; result (2, TB) is lane-dense.
    out = jnp.dot(w2_ref[...].astype(jnp.float32), h,
                  preferred_element_type=jnp.float32)
    out = out + b2_ref[...].astype(jnp.float32)              # (2, TB)

    oT_ref[...] = out.astype(oT_ref.dtype)


@functools.partial(jax.jit, static_argnames=("block_n",))
def odefunc_correction_forward(t, y, w1, b1, w2, b2, *, block_n=8192):
    """Pallas implementation of ODEFunc_correction.forward(t, y).

    t is unused (matches the PyTorch module). y: (N, 2) float32.
    w1: (50, 2), b1: (50,), w2: (2, 50), b2: (2,)  -- PyTorch nn.Linear layout.
    block_n: batch tile on the lane axis (multiple of 128; ~8K-32K amortizes
    per-step overhead while staying far below VMEM limits on all generations).
    """
    del t  # unused, as in the reference module
    n, din = y.shape        # (N, 2)
    hid = w1.shape[0]       # 50
    dout = w2.shape[0]      # 2

    # Feature-major re-layout (glue, outside the kernel): batch on the lane axis.
    yT = y.T                       # (2, N)
    b1c = b1.reshape(hid, 1)       # (50, 1)
    b2c = b2.reshape(dout, 1)      # (2, 1)

    if n <= block_n:
        tb = n                     # full-extent lane block (allowed for any n)
    else:
        tb = block_n               # multiple of 128; last partial block is padded
    grid = (pl.cdiv(n, tb),)

    cost = pl.CostEstimate(
        flops=2 * n * (din * hid + hid * dout),
        transcendentals=n * hid,
        bytes_accessed=4 * (n * (din + dout) + hid * din + hid + dout * hid + dout),
    )

    outT = pl.pallas_call(
        _odefunc_kernel,
        out_shape=jax.ShapeDtypeStruct((dout, n), y.dtype),
        grid_spec=pltpu.PrefetchScalarGridSpec(
            num_scalar_prefetch=0,
            grid=grid,
            in_specs=[
                pl.BlockSpec((din, tb), lambda i: (0, i)),     # y^T tile (lane-dense)
                pl.BlockSpec((hid, din), lambda i: (0, 0)),    # W1 (full, hoisted DMA)
                pl.BlockSpec((hid, 1), lambda i: (0, 0)),      # b1 (full)
                pl.BlockSpec((dout, hid), lambda i: (0, 0)),   # W2 (full)
                pl.BlockSpec((dout, 1), lambda i: (0, 0)),     # b2 (full)
            ],
            out_specs=pl.BlockSpec((dout, tb), lambda i: (0, i)),  # out^T tile
        ),
        compiler_params=pltpu.CompilerParams(
            # Batch axis is embarrassingly parallel -> 2-TC sharding on v7x.
            dimension_semantics=("parallel",),
        ),
        cost_estimate=cost,
    )(yT, w1, b1c, w2, b2c)

    return outT.T                  # (N, 2)


def _init_params(key):
    """Deterministic init mimicking PyTorch nn.Linear default (U(-1/sqrt(fan_in), +))."""
    k1, k2, k3, k4 = jax.random.split(key, 4)
    bound1 = 1.0 / jnp.sqrt(2.0)
    w1 = jax.random.uniform(k1, (50, 2), jnp.float32, -bound1, bound1)
    b1 = jax.random.uniform(k2, (50,), jnp.float32, -bound1, bound1)
    bound2 = 1.0 / jnp.sqrt(50.0)
    w2 = jax.random.uniform(k3, (2, 50), jnp.float32, -bound2, bound2)
    b2 = jax.random.uniform(k4, (2,), jnp.float32, -bound2, bound2)
    return w1, b1, w2, b2


def _reference(y, w1, b1, w2, b2):
    h = jnp.tanh(y @ w1.T + b1)
    return h @ w2.T + b2


if __name__ == "__main__":
    key = jax.random.PRNGKey(0)
    kp, ky = jax.random.split(key)
    w1, b1, w2, b2 = _init_params(kp)

    # Small example: batch of 256 states, each state 2-dimensional (lane-dense tile).
    n = 256
    y = jax.random.normal(ky, (n, 2), jnp.float32)
    t = jnp.float32(0.0)  # unused by the module, kept for signature parity

    out = odefunc_correction_forward(t, y, w1, b1, w2, b2)
    out = jax.block_until_ready(out)

    ref = _reference(y, w1, b1, w2, b2)
    assert out.shape == (n, 2), out.shape
    assert jnp.allclose(out, ref, atol=2e-5, rtol=1e-5), (
        f"max err {jnp.max(jnp.abs(out - ref))}"
    )
    print("KERNEL_OK")
</pallas_src>

<mosaic_0001>
module attributes {stable_mosaic.version = 11 : i64} {
  func.func @_odefunc_kernel(%arg0: i32, %arg1: memref<2x256xf32, #tpu.memory_space<vmem>>, %arg2: memref<50x2xf32, #tpu.memory_space<vmem>>, %arg3: memref<50x1xf32, #tpu.memory_space<vmem>>, %arg4: memref<2x50xf32, #tpu.memory_space<vmem>>, %arg5: memref<2x1xf32, #tpu.memory_space<vmem>>, %arg6: memref<2x256xf32, #tpu.memory_space<vmem>>) attributes {dimension_semantics = [#tpu.dimension_semantics<parallel>], iteration_bounds = array<i64: 1>, scalar_prefetch = 0 : i64, scratch_operands = 0 : i64, tpu.core_type = #tpu.core_type<tc>, window_params = [{transform_indices = @transform_0, window_bounds = array<i64: 2, 256>}, {pipeline_mode = #tpu.pipeline_mode<synchronous>, transform_indices = @transform_1, window_bounds = array<i64: 50, 2>}, {pipeline_mode = #tpu.pipeline_mode<synchronous>, transform_indices = @transform_2, window_bounds = array<i64: 50, 1>}, {pipeline_mode = #tpu.pipeline_mode<synchronous>, transform_indices = @transform_3, window_bounds = array<i64: 2, 50>}, {pipeline_mode = #tpu.pipeline_mode<synchronous>, transform_indices = @transform_4, window_bounds = array<i64: 2, 1>}, {transform_indices = @transform_5, window_bounds = array<i64: 2, 256>}]} {
    %c0 = arith.constant 0 : index
    %c0_0 = arith.constant 0 : index
    %0 = vector.load %arg2[%c0, %c0_0] : memref<50x2xf32, #tpu.memory_space<vmem>>, vector<50x2xf32>
    %c0_1 = arith.constant 0 : index
    %c0_2 = arith.constant 0 : index
    %1 = vector.load %arg1[%c0_1, %c0_2] : memref<2x256xf32, #tpu.memory_space<vmem>>, vector<1x256xf32>
    %c1 = arith.constant 1 : index
    %c0_3 = arith.constant 0 : index
    %2 = vector.load %arg1[%c1, %c0_3] : memref<2x256xf32, #tpu.memory_space<vmem>>, vector<1x256xf32>
    %3 = vector.extract_strided_slice %0 {offsets = [0, 0], sizes = [50, 1], strides = [1, 1]} : vector<50x2xf32> to vector<50x1xf32>
    %4 = vector.broadcast %3 : vector<50x1xf32> to vector<50x256xf32>
    %5 = vector.broadcast %1 : vector<1x256xf32> to vector<50x256xf32>
    %6 = arith.mulf %4, %5 : vector<50x256xf32>
    %7 = vector.extract_strided_slice %0 {offsets = [0, 1], sizes = [50, 1], strides = [1, 1]} : vector<50x2xf32> to vector<50x1xf32>
    %8 = vector.broadcast %7 : vector<50x1xf32> to vector<50x256xf32>
    %9 = vector.broadcast %2 : vector<1x256xf32> to vector<50x256xf32>
    %10 = arith.mulf %8, %9 : vector<50x256xf32>
    %11 = arith.addf %6, %10 : vector<50x256xf32>
    %c0_4 = arith.constant 0 : index
    %c0_5 = arith.constant 0 : index
    %12 = vector.load %arg3[%c0_4, %c0_5] : memref<50x1xf32, #tpu.memory_space<vmem>>, vector<50x1xf32>
    %13 = vector.broadcast %12 : vector<50x1xf32> to vector<50x256xf32>
    %14 = arith.addf %11, %13 : vector<50x256xf32>
    %15 = math.tanh %14 : vector<50x256xf32>
    %c0_6 = arith.constant 0 : index
    %c0_7 = arith.constant 0 : index
    %16 = vector.load %arg4[%c0_6, %c0_7] : memref<2x50xf32, #tpu.memory_space<vmem>>, vector<2x50xf32>
    %cst = arith.constant dense<0.000000e+00> : vector<2x256xf32>
    %17 = tpu.matmul %16, %15, %cst {dimension_numbers = #tpu.dot_dimension_numbers<[1], [0], [0], [1], [0, 0, 1, 1], [], []>} : vector<2x50xf32>, vector<50x256xf32>, vector<2x256xf32> -> vector<2x256xf32>
    %c0_8 = arith.constant 0 : index
    %c0_9 = arith.constant 0 : index
    %18 = vector.load %arg5[%c0_8, %c0_9] : memref<2x1xf32, #tpu.memory_space<vmem>>, vector<2x1xf32>
    %19 = vector.broadcast %18 : vector<2x1xf32> to vector<2x256xf32>
    %20 = arith.addf %17, %19 : vector<2x256xf32>
    %c0_10 = arith.constant 0 : index
    %c0_11 = arith.constant 0 : index
    %21 = vector.load %arg6[%c0_10, %c0_11] : memref<2x256xf32, #tpu.memory_space<vmem>>, vector<2x256xf32>
    tpu.vector_store %arg6[%c0_10, %c0_11], %20 {strides = array<i32>} : memref<2x256xf32, #tpu.memory_space<vmem>>, vector<2x256xf32>,
    return
  }
  func.func @transform_0(%arg0: i32) -> (i32, i32) {
    %c0_i32 = arith.constant 0 : i32
    %c0_i32_0 = arith.constant 0 : i32
    return %c0_i32, %arg0 : i32, i32
  }
  func.func @transform_1(%arg0: i32) -> (i32, i32) {
    %c0_i32 = arith.constant 0 : i32
    %c0_i32_0 = arith.constant 0 : i32
    %c0_i32_1 = arith.constant 0 : i32
    return %c0_i32, %c0_i32_0 : i32, i32
  }
  func.func @transform_2(%arg0: i32) -> (i32, i32) {
    %c0_i32 = arith.constant 0 : i32
    %c0_i32_0 = arith.constant 0 : i32
    %c0_i32_1 = arith.constant 0 : i32
    return %c0_i32, %c0_i32_0 : i32, i32
  }
  func.func @transform_3(%arg0: i32) -> (i32, i32) {
    %c0_i32 = arith.constant 0 : i32
    %c0_i32_0 = arith.constant 0 : i32
    %c0_i32_1 = arith.constant 0 : i32
    return %c0_i32, %c0_i32_0 : i32, i32
  }
  func.func @transform_4(%arg0: i32) -> (i32, i32) {
    %c0_i32 = arith.constant 0 : i32
    %c0_i32_0 = arith.constant 0 : i32
    %c0_i32_1 = arith.constant 0 : i32
    return %c0_i32, %c0_i32_0 : i32, i32
  }
  func.func @transform_5(%arg0: i32) -> (i32, i32) {
    %c0_i32 = arith.constant 0 : i32
    %c0_i32_0 = arith.constant 0 : i32
    return %c0_i32, %arg0 : i32, i32
  }
}

</mosaic_0001>

<bundles_post_ra>
// kernel: odefunc_correction_forward.1
= control target key start
LH: loop header
LB: loop body
LE: loop exit
PB: predicated region body
PF: predicated region fallthrough
CT: control target
= control target key end

     0   :  { %v426_v2 = vmov 1   ;;  %s566_s0 = inlined_call_operand.vmem [shape: f32[2,256], index: 0, kind: input, shape index: {}]   ;;  %s567_s1 = inlined_call_operand.vmem [shape: f32[50,2], index: 1, kind: input, shape index: {}]   ;;  %s568_s2 = inlined_call_operand.vmem [shape: f32[50,1], index: 2, kind: input, shape index: {}]   ;;  %s569_s3 = inlined_call_operand.vmem [shape: f32[2,50], index: 3, kind: input, shape index: {}]   ;;  %s570_s4 = inlined_call_operand.vmem [shape: f32[2,1], index: 4, kind: input, shape index: {}]   ;;  %s571_s5 = inlined_call_operand.hbm [shape: f32[2,256], index: 5, kind: output, shape index: {}]  }
   0x1   :  { %v23_v0 = vld [vmem:[%s567_s1 + $0x10] sm:$0xff]  ;;  %v21_v1 = vld [vmem:[%s567_s1] sm:$0xff]  ;;  %366 = vset.pattern.permute.xlu0 %v426_v2  ;;  %364 = vset.pattern.permute.xlu1 %v426_v2  ;;  %v22_v4 = vld [vmem:[%s567_s1 + $0x8] sm:$0xff] }
   0x2   :  { %100 = vperm.xlu0 %366, %v23_v0   ;;  %92 = vperm.xlu1 %364, %v21_v1   ;;  %v25_v3 = vld [vmem:[%s567_s1 + $0x20] sm:$0xff] }
   0x3   :  { %10 = vsyncpa [#allocation3], 0  ;;  %v24_v5 = vld [vmem:[%s567_s1 + $0x18] sm:$0xff]  ;;  %v427_v6 = vmov 0   ;;  %v158_v7 = vld [vmem:[%s568_s2] sm:$0xff]  ;;  %v428_v16 = vmov 0.0   ;;  %v67_v18 = vlaneseq }
   0x4   :  { %v159_v8 = vld [vmem:[%s568_s2 + $0x8] sm:$0xff]  ;;  %v161_v9 = vld [vmem:[%s568_s2 + $0x18] sm:$0xff]  ;;  %v27_v11 = vld [vmem:[%s567_s1 + $0x30] sm:$0x3]  ;;  %310 = vmatprep.mubr.f32.mxu0 %v428_v16  ;;  %vm239_vm0 = vcmask 1041408   ;;  %vm235_vm1 = vcmask 408576  }
   0x5   :  { %v26_v10 = vld [vmem:[%s567_s1 + $0x28] sm:$0xff]  ;;  %v164_v12 = vld [vmem:[%s568_s2 + $0x30] sm:$0x3]  ;;  %v162_v14 = vld [vmem:[%s568_s2 + $0x20] sm:$0xff]  ;;  %v68_v21 = vshrl.u32 %v67_v18, 7  ;;  %s429_s25 = smov [#allocation2]  }
   0x6   :  { %108 = vperm.xlu0 %366, %v25_v3   ;;  %96 = vperm.xlu1 %364, %v22_v4   ;;  %v160_v13 = vld [vmem:[%s568_s2 + $0x10] sm:$0xff]  ;;  %v163_v15 = vld [vmem:[%s568_s2 + $0x28] sm:$0xff]  ;;  %v229_v17 = vld [vmem:[%s570_s4] sm:$0x3]  ;;  %s335_s26 = sshll.u32 %s429_s25, 4  ;;  %s336_s26 = int_to_ptr.vmem [resolvable:$true] %s335_s26 }
   0x7   :  { %v28_v24 = vld [vmem:[%s566_s0] ss:$2 sm:$0x3]  ;;  %v69_v25 = vsub.s32 0, %v68_v21  ;;  %v73_v26 = vsub.s32 1, %v68_v21  ;;  %s402_s27 = scalar_lea.vmem %s336_s26, 64  ;;  %p407_p1 = scmp.lt.s32.totalorder %s336_s26, %s336_s26 }
   0x8   :  { %v343_v27 = vld [vmem:[%s566_s0 + $0x1] ss:$2 sm:$0x3]  ;;  %p403_p0 = scmp.ne.s32.totalorder %s336_s26, %s402_s27  ;;  %p408_p2 = scmp.lt.s32.totalorder %s402_s27, %s402_s27 }
   0x9   :  { %v513_v30 = vrot.slane %v28_v24, %v69_v25  ;;  %v515_v31 = vrot.slane %v28_v24, %v73_v26  ;;  %v517_v32 = vrot.slane %v343_v27, %v69_v25  ;;  %v519_v33 = vrot.slane %v343_v27, %v73_v26 }
   0xa   :  { %369 = vset.pattern.permute.xlu0 %v427_v6  ;;  %365 = vset.pattern.permute.xlu1 %v427_v6  ;;  %p409_p3 = por %p408_p2, %p407_p1 }
   0xb   :  { %33 = vperm.xlu0 %369, %v21_v1   ;;  %48 = vperm.xlu1 %365, %v24_v5  }
   0xc   :  { %p410_p4 = pnand %p409_p3, %p403_p0 }
   0xf   :  { %38 = vperm.xlu0 %369, %v22_v4   ;;  %367 = vset.pattern.permute.xlu1 %v426_v2 }
  0x10   :  { %104 = vperm.xlu1 %367, %v24_v5  }
  0x13   :  { %43 = vperm.xlu0 %369, %v23_v0  }
  0x14   :  { %368 = vset.pattern.permute.xlu1 %v427_v6 }
  0x15   :  { %167 = vperm.xlu1 %368, %v158_v7  }
  0x17   :  { %172 = vperm.xlu0 %369, %v159_v8  }
  0x19   :  { %53 = vperm.xlu1 %368, %v25_v3  }
  0x1b   :  { %182 = vperm.xlu0 %369, %v161_v9  }
  0x1d   :  { %58 = vperm.xlu1 %368, %v26_v10  }
  0x1f   :  { %63 = vperm.xlu0 %369, %v27_v11  }
  0x21   :  { %370 = vset.pattern.permute.xlu1 %v426_v2 }
  0x22   :  { %112 = vperm.xlu1 %370, %v26_v10  }
  0x23   :  { %197 = vperm.xlu0 %369, %v164_v12  }
  0x26   :  { %371 = vset.pattern.permute.xlu1 %v427_v6 }
  0x27   :  { %177 = vperm.xlu1 %371, %v160_v13  }
  0x2b   :  { %187 = vperm.xlu1 %371, %v162_v14  }
  0x2f   :  { %192 = vperm.xlu1 %371, %v163_v15  }
  0x33   :  { %372 = vset.pattern.permute.xlu1 %v426_v2 }
  0x34   :  { %116 = vperm.xlu1 %372, %v27_v11  }
  0x38   :  { %373 = vset.pattern.permute.xlu1 %v427_v6 }
  0x39   :  { %232 = vperm.xlu1 %373, %v229_v17  }
  0x81   :  { %v93_v19 = vpop.permute.xlu1 %92  ;;  %v101_v20 = vpop.permute.xlu0 %100 }
  0x82   :  { %v130_v38 = vmul.f32 %v517_v32, %v93_v19  ;;  %v131_v39 = vmul.f32 %v519_v33, %v93_v19  ;;  %v134_v60 = vmul.f32 %v517_v32, %v101_v20  ;;  %v135_v0 = vmul.f32 %v519_v33, %v101_v20 }
  0x85   :  { %v97_v22 = vpop.permute.xlu1 %96  ;;  %v505_v23 = vpop.permute.xlu0 %108 }
  0x86   :  { %v132_v43 = vmul.f32 %v517_v32, %v97_v22  ;;  %v133_v44 = vmul.f32 %v519_v33, %v97_v22  ;;  %v138_v18 = vmul.f32 %v517_v32, %v505_v23  ;;  %v139_v21 = vmul.f32 %v519_v33, %v505_v23 }
  0x8a   :  { %v34_v28 = vpop.permute.xlu0 %33  ;;  %v49_v29 = vpop.permute.xlu1 %48 }
  0x8b   :  { %v77_v35 = vmul.f32 %v513_v30, %v34_v28  ;;  %v78_v36 = vmul.f32 %v515_v31, %v34_v28  ;;  %v83_v59 = vmul.f32 %v513_v30, %v49_v29  ;;  %v84_v61 = vmul.f32 %v515_v31, %v49_v29 }
  0x8d   :  { %v144_v45 = vadd.f32 %v130_v38, %v77_v35  ;;  %v145_v46 = vadd.f32 %v131_v39, %v78_v36 }
  0x8e   :  { %v39_v34 = vpop.permute.xlu0 %38 }
  0x8f   :  { %v105_v37 = vpop.permute.xlu1 %104  ;;  %v79_v40 = vmul.f32 %v513_v30, %v39_v34  ;;  %v80_v41 = vmul.f32 %v515_v31, %v39_v34 }
  0x90   :  { %v136_v57 = vmul.f32 %v517_v32, %v105_v37  ;;  %v137_v58 = vmul.f32 %v519_v33, %v105_v37 }
  0x91   :  { %v146_v50 = vadd.f32 %v132_v43, %v79_v40  ;;  %v147_v51 = vadd.f32 %v133_v44, %v80_v41 }
  0x92   :  { %v44_v42 = vpop.permute.xlu0 %43  ;;  %v150_v3 = vadd.f32 %v136_v57, %v83_v59  ;;  %v151_v6 = vadd.f32 %v137_v58, %v84_v61  ;;  %v228_v61 = vld [vmem:[%s569_s3] sm:$0x3] }
  0x93   :  { %v81_v1 = vmul.f32 %v513_v30, %v44_v42  ;;  %v82_v2 = vmul.f32 %v515_v31, %v44_v42 }
  0x94   :  { %v168_v47 = vpop.permute.xlu1 %167 }
  0x95   :  { %v200_v48 = vadd.f32 %v168_v47, %v144_v45  ;;  %v201_v49 = vadd.f32 %v168_v47, %v145_v46  ;;  %v148_v14 = vadd.f32 %v134_v60, %v81_v1  ;;  %v149_v15 = vadd.f32 %v135_v0, %v82_v2 }
  0x96   :  { %v173_v52 = vpop.permute.xlu0 %172 }
  0x97   :  { %374 = vtanh.f32 %v200_v48  ;;  %v202_v53 = vadd.f32 %v173_v52, %v146_v50  ;;  %v203_v54 = vadd.f32 %v173_v52, %v147_v51 }
  0x98   :  { %376 = vtanh.f32 %v201_v49  ;;  %v54_v55 = vpop.permute.xlu1 %53 }
  0x99   :  { %378 = vtanh.f32 %v202_v53  ;;  %v85_v12 = vmul.f32 %v513_v30, %v54_v55  ;;  %v86_v16 = vmul.f32 %v515_v31, %v54_v55 }
  0x9a   :  { %380 = vtanh.f32 %v203_v54  ;;  %v183_v62 = vpop.permute.xlu0 %182 }
  0x9b   :  { %v206_v8 = vadd.f32 %v183_v62, %v150_v3  ;;  %v207_v10 = vadd.f32 %v183_v62, %v151_v6  ;;  %v152_v25 = vadd.f32 %v138_v18, %v85_v12  ;;  %v153_v26 = vadd.f32 %v139_v21, %v86_v16 }
  0x9c   :  { %v59_v56 = vpop.permute.xlu1 %58 }
  0x9d   :  { %382 = vtanh.f32 %v206_v8  ;;  %v87_v28 = vmul.f32 %v513_v30, %v59_v56  ;;  %v88_v29 = vmul.f32 %v515_v31, %v59_v56 }
  0x9e   :  { %384 = vtanh.f32 %v207_v10  ;;  %v64_v40 = vpop.permute.xlu0 %63 }
  0x9f   :  { %v89_v44 = vmul.f32 %v513_v30, %v64_v40  ;;  %v90_v47 = vmul.f32 %v515_v31, %v64_v40 }
  0xa1   :  { %v375_v63 = vpop.eup %374  ;;  %v113_v4 = vpop.permute.xlu1 %112 }
  0xa2   :  { %v377_v5 = vpop.eup %376  ;;  %v140_v22 = vmul.f32 %v517_v32, %v113_v4  ;;  %v141_v24 = vmul.f32 %v519_v33, %v113_v4  ;;  %v198_v54 = vpop.permute.xlu0 %197 }
  0xa3   :  { %v379_v7 = vpop.eup %378 }
  0xa4   :  { %v381_v9 = vpop.eup %380  ;;  %v350_v11 = vpack.c.bf16 %v379_v7, %v375_v63  ;;  %v154_v36 = vadd.f32 %v140_v22, %v87_v28  ;;  %v155_v37 = vadd.f32 %v141_v24, %v88_v29 }
  0xa5   :  { %v348_v13 = vpack.c.bf16 %v381_v9, %v377_v5 }
  0xa6   :  { %v178_v17 = vpop.permute.xlu1 %177 }
  0xa7   :  { %349 = vmatprep.subr.bf16.mxu0 %v348_v13  ;;  %v204_v19 = vadd.f32 %v178_v17, %v148_v14  ;;  %v205_v20 = vadd.f32 %v178_v17, %v149_v15  ;;  %v383_v41 = vpop.eup %382 }
  0xa8   :  { %351 = vmatpush1.bf16.msra.mxu0 %v350_v11  ;;  %v385_v42 = vpop.eup %384 }
  0xa9   :  { %386 = vtanh.f32 %v204_v19 }
  0xaa   :  { %388 = vtanh.f32 %v205_v20  ;;  %v188_v27 = vpop.permute.xlu1 %187 }
  0xab   :  { %v208_v34 = vadd.f32 %v188_v27, %v152_v25  ;;  %v209_v35 = vadd.f32 %v188_v27, %v153_v26 }
  0xad   :  { %390 = vtanh.f32 %v208_v34 }
  0xae   :  { %v193_v23 = vpop.permute.xlu1 %192  ;;  %392 = vtanh.f32 %v209_v35 }
  0xaf   :  { %v210_v38 = vadd.f32 %v193_v23, %v154_v36  ;;  %v211_v39 = vadd.f32 %v193_v23, %v155_v37 }
  0xb1   :  { %394 = vtanh.f32 %v210_v38 }
  0xb2   :  { %396 = vtanh.f32 %v211_v39 }
  0xb3   :  { %v387_v43 = vpop.eup %386  ;;  %v117_v45 = vpop.permute.xlu1 %116 }
  0xb4   :  { %v389_v46 = vpop.eup %388  ;;  %v142_v48 = vmul.f32 %v517_v32, %v117_v45  ;;  %v143_v49 = vmul.f32 %v519_v33, %v117_v45  ;;  %v354_v50 = vpack.c.bf16 %v383_v41, %v387_v43 }
  0xb5   :  { %v352_v51 = vpack.c.bf16 %v385_v42, %v389_v46 }
  0xb6   :  { %v156_v52 = vadd.f32 %v142_v48, %v89_v44  ;;  %v157_v53 = vadd.f32 %v143_v49, %v90_v47 }
  0xb7   :  { %353 = vmatprep.subr.bf16.mxu0 %v352_v51  ;;  %v391_v57 = vpop.eup %390 }
  0xb8   :  { %v212_v55 = vadd.f32 %v198_v54, %v156_v52  ;;  %v213_v56 = vadd.f32 %v198_v54, %v157_v53  ;;  %355 = vmatpush1.bf16.msra.mxu0 %v354_v50  ;;  %v393_v58 = vpop.eup %392  ;;  %v233_v62 = vpop.permute.xlu1 %232 }
  0xba   :  { %398 = vtanh.f32 %v212_v55 }
  0xbb   :  { %v395_v30 = vpop.eup %394  ;;  %400 = vtanh.f32 %v213_v56 }
  0xbc   :  { %v397_v59 = vpop.eup %396  ;;  %v358_v31 = vpack.c.bf16 %v395_v30, %v391_v57 }
  0xbd   :  { %v356_v60 = vpack.c.bf16 %v397_v59, %v393_v58 }
  0xbf   :  { %357 = vmatprep.subr.bf16.mxu0 %v356_v60 }
  0xc0   :  { %359 = vmatpush1.bf16.msra.mxu0 %v358_v31 }
  0xc4   :  { %v399_v32 = vpop.eup %398 }
  0xc5   :  { %v401_v33 = vpop.eup %400 }
  0xc6   :  { %344 = vmatprep.subr.msk.mxu0 %vm239_vm0, %v401_v33 }
  0xc7   :  { %345 = vmatpush1.msk.msra.mxu0 %vm239_vm0, %v399_v32 }
  0xc8   :  { %346 = vmatmul.mubr.msk.f32.vlgmr.msra.gmra.mrb[0].mxu0 %vm235_vm1, %v228_v61 }
 0x19b   :  { %v312_v63 = vpop.f32.mrb[0].mxu0 }
 0x19c   :  { %v313_v0 = vadd.f32 %v312_v63, %v233_v62  ;;  %v314_v1 = vpop.f32.mrb[1].mxu0 }
 0x19d   :  { %v315_v2 = vadd.f32 %v314_v1, %v233_v62 }
 0x19f   :  { %v319_v3 = vcombine.low %v313_v0, %v315_v2 }
 0x1a1   :  { %347 = vst.sshfl [vmem:[#allocation2] sm:$0x33 pattern:$0x76325410] %v319_v3 }
 0x1a2   :  { %413 = shalt.err (!%p410_p4)
}
 0x1a3   :  { %s414_s29 = scalar_lea.hbm %s571_s5, 64 }
 0x1a4   :  { %p415_p5 = scmp.ne.s32.totalorder %s571_s5, %s414_s29  ;;  %p418_p6 = scmp.lt.u32.totalorder %s414_s29, %s571_s5 }
 0x1a6   :  { %p420_p7 = pnand %p418_p6, %p415_p5 }
 0x1a8   :  { %423 = shalt.err (!%p420_p7)
}
 0x1a9   :  { %338 = dma.vmem_to_hbm [thread:$0]  %s336_s26, 64, %s571_s5, [#allocation3]  }
 0x1aa   :  { %424 = dma.done.wait [#allocation3], 64  }
 0x1ab   :  { %425 = vsyncadd [#allocation3], 4294967232 }
 0x1ac   :  { %342 = vsyncpa [#allocation3], 1 }

</bundles_post_ra>
